<compile_context>
chip_gen: v7x
topology: tpu7x:2x2x1
jax: 0.10.0
libtpu: 0.0.40
codegen_flags: <defaults>
</compile_context>

<pallas_src>
import jax
import jax.numpy as jnp
from jax import lax
from jax.experimental import pallas as pl
from jax.experimental.pallas import tpu as pltpu


def gru_encoder_kernel(xproj_ref,   # (S, 3L) f32: per-token [x@Wzx+bz | x@Wrx+br | x@Whx+bh]
                       wzr_ref,     # (L, 2L) f32: [Wzh | Wrh] fused along lanes
                       whh_ref,     # (L, L)  f32: Whh
                       out_ref):    # (S, L)  f32: hidden-state sequence
    seq_len = xproj_ref.shape[0]
    latent = out_ref.shape[1]

    xproj = xproj_ref[...]          # load the whole (S, 3L) block once
    wzr = wzr_ref[...]
    whh = whh_ref[...]

    h = jnp.zeros((1, latent), dtype=jnp.float32)
    hs = []
    # Fully unrolled: seq_len is a small static trip count (8).
    for t in range(seq_len):
        x_t = xproj[t:t + 1, :]                                   # (1, 3L) static slice
        # z and r share one MXU push: h @ [Wzh|Wrh] + x-part, one sigmoid over 2L lanes.
        zr = jax.nn.sigmoid(
            jnp.dot(h, wzr, preferred_element_type=jnp.float32)
            + x_t[:, : 2 * latent])                               # (1, 2L)
        z = zr[:, :latent]
        r = zr[:, latent:]
        h_tilde = jnp.tanh(
            jnp.dot(r * h, whh, preferred_element_type=jnp.float32)
            + x_t[:, 2 * latent:])                                # (1, L)
        h = (1.0 - z) * h + z * h_tilde
        hs.append(h)

    # Single dense (S, L) store instead of S masked 1-sublane stores.
    out_ref[...] = jnp.concatenate(hs, axis=0)


def init_encodeur_params(key, vocab_size, embed_dim, latent_dim, output_dim):
    """Deterministic parameter init mimicking PyTorch defaults (shapes only matter)."""
    ks = jax.random.split(key, 6)
    in_dim = embed_dim + latent_dim
    bound = 1.0 / jnp.sqrt(jnp.float32(in_dim))

    def linear_T(k):
        # nn.Linear(in_dim, latent_dim).weight is (L, in_dim); store transposed (in_dim, L),
        # rows [0:L] multiply h, rows [L:] multiply x (concat order is (h, x)).
        kw, kb = jax.random.split(k)
        w_t = jax.random.uniform(kw, (in_dim, latent_dim), jnp.float32, -bound, bound)
        b = jax.random.uniform(kb, (latent_dim,), jnp.float32, -bound, bound)
        return w_t[:latent_dim], w_t[latent_dim:], b.reshape(1, latent_dim)

    wzh, wzx, bz = linear_T(ks[0])
    wrh, wrx, br = linear_T(ks[1])
    whh, whx, bh = linear_T(ks[2])
    embedding = jax.random.normal(ks[3], (vocab_size, embed_dim), jnp.float32)
    # linear_out (unused in forward) — initialized for completeness.
    wo = jax.random.uniform(ks[4], (latent_dim, output_dim), jnp.float32, -bound, bound)
    bo = jax.random.uniform(ks[5], (output_dim,), jnp.float32, -bound, bound)
    return dict(embedding=embedding,
                wzh=wzh, wzx=wzx, bz=bz,
                wrh=wrh, wrx=wrx, br=br,
                whh=whh, whx=whx, bh=bh,
                wo=wo, bo=bo)


def encodeur_forward(sentence, params):
    """sentence: (seq_len,) int32 token ids. Returns (seq_len, 1, latent_dim) f32."""
    S = sentence.shape[0]
    L = params["bz"].shape[-1]

    # Fold the x-side projections + biases into the embedding table once
    # (vocab is tiny: one (V, E) x (E, 3L) matmul), then gather projected rows per token.
    # The gather replaces the original embedding lookup, so it's free.
    w_x = jnp.concatenate([params["wzx"], params["wrx"], params["whx"]], axis=1)   # (E, 3L)
    b_x = jnp.concatenate([params["bz"], params["br"], params["bh"]], axis=1)      # (1, 3L)
    proj_table = jnp.dot(params["embedding"].astype(jnp.float32), w_x,
                         preferred_element_type=jnp.float32) + b_x                 # (V, 3L)
    x_proj = jnp.take(proj_table, sentence, axis=0)                                # (S, 3L)

    # Fuse the z/r hidden-state weights into one (L, 2L) matrix.
    w_zr = jnp.concatenate([params["wzh"], params["wrh"]], axis=1)                 # (L, 2L)

    vmem = pl.BlockSpec(memory_space=pltpu.MemorySpace.VMEM)
    gru_hidden = pl.pallas_call(
        gru_encoder_kernel,
        out_shape=jax.ShapeDtypeStruct((S, L), jnp.float32),
        in_specs=[vmem, vmem, vmem],
        out_specs=vmem,
    )(x_proj, w_zr, params["whh"])

    return gru_hidden.reshape(S, 1, L)   # (length, batch=1, latent), like the PyTorch GRU


def encodeur_forward_ref(sentence, params):
    """Pure-JAX reference of the same forward pass (for correctness check) — unfused weights."""
    embeds = jnp.take(params["embedding"], sentence, axis=0).astype(jnp.float32)
    L = params["bz"].shape[-1]

    def step(h, x_t):
        x_t = x_t[None, :]
        z = jax.nn.sigmoid(h @ params["wzh"] + x_t @ params["wzx"] + params["bz"])
        r = jax.nn.sigmoid(h @ params["wrh"] + x_t @ params["wrx"] + params["br"])
        h_tilde = jnp.tanh((r * h) @ params["whh"] + x_t @ params["whx"] + params["bh"])
        h_new = (1.0 - z) * h + z * h_tilde
        return h_new, h_new

    h0 = jnp.zeros((1, L), jnp.float32)
    _, hs = lax.scan(step, h0, embeds)
    return hs   # (S, 1, L)


if __name__ == "__main__":
    # Small, module-consistent shapes.
    vocab = ["<pad>", "<sos>", "<eos>", "le", "chat", "dort", "sur", "tapis", "un", "bleu", "."]
    vocab_size = len(vocab)          # 11
    embed_dim = 16
    latent_dim = 32
    output_dim = 10                  # unused by Encodeur.forward
    seq_len = 8

    key = jax.random.PRNGKey(0)
    k_params, k_sent = jax.random.split(key)
    params = init_encodeur_params(k_params, vocab_size, embed_dim, latent_dim, output_dim)
    sentence = jax.random.randint(k_sent, (seq_len,), 0, vocab_size, dtype=jnp.int32)

    fwd = jax.jit(encodeur_forward)
    out = jax.block_until_ready(fwd(sentence, params))

    ref = jax.block_until_ready(encodeur_forward_ref(sentence, params))
    assert out.shape == (seq_len, 1, latent_dim), out.shape
    assert jnp.allclose(out, ref, atol=1e-5, rtol=1e-5), float(jnp.max(jnp.abs(out - ref)))

    print("KERNEL_OK")
</pallas_src>

<mosaic_0001>
module attributes {stable_mosaic.version = 11 : i64} {
  func.func @gru_encoder_kernel(%arg0: memref<8x96xf32, #tpu.memory_space<vmem>>, %arg1: memref<32x64xf32, #tpu.memory_space<vmem>>, %arg2: memref<32x32xf32, #tpu.memory_space<vmem>>, %arg3: memref<8x32xf32, #tpu.memory_space<vmem>>) attributes {dimension_semantics = [], scalar_prefetch = 0 : i64, scratch_operands = 0 : i64, tpu.core_type = #tpu.core_type<tc>} {
    %c0 = arith.constant 0 : index
    %c0_0 = arith.constant 0 : index
    %0 = vector.load %arg0[%c0, %c0_0] : memref<8x96xf32, #tpu.memory_space<vmem>>, vector<8x96xf32>
    %c0_1 = arith.constant 0 : index
    %c0_2 = arith.constant 0 : index
    %1 = vector.load %arg1[%c0_1, %c0_2] : memref<32x64xf32, #tpu.memory_space<vmem>>, vector<32x64xf32>
    %c0_3 = arith.constant 0 : index
    %c0_4 = arith.constant 0 : index
    %2 = vector.load %arg2[%c0_3, %c0_4] : memref<32x32xf32, #tpu.memory_space<vmem>>, vector<32x32xf32>
    %cst = arith.constant 0.000000e+00 : f32
    %3 = vector.broadcast %cst : f32 to vector<1x32xf32>
    %4 = vector.extract_strided_slice %0 {offsets = [0, 0], sizes = [1, 96], strides = [1, 1]} : vector<8x96xf32> to vector<1x96xf32>
    %cst_5 = arith.constant dense<0.000000e+00> : vector<1x64xf32>
    %5 = tpu.matmul %3, %1, %cst_5 {dimension_numbers = #tpu.dot_dimension_numbers<[1], [0], [0], [1], [0, 0, 1, 1], [], []>} : vector<1x32xf32>, vector<32x64xf32>, vector<1x64xf32> -> vector<1x64xf32>
    %6 = vector.extract_strided_slice %4 {offsets = [0, 0], sizes = [1, 64], strides = [1, 1]} : vector<1x96xf32> to vector<1x64xf32>
    %7 = arith.addf %5, %6 : vector<1x64xf32>
    %8 = arith.negf %7 : vector<1x64xf32>
    %9 = math.exp %8 : vector<1x64xf32>
    %cst_6 = arith.constant 1.000000e+00 : f32
    %10 = vector.broadcast %cst_6 : f32 to vector<1x64xf32>
    %11 = arith.addf %10, %9 : vector<1x64xf32>
    %12 = arith.divf %10, %11 : vector<1x64xf32>
    %13 = vector.extract_strided_slice %12 {offsets = [0, 0], sizes = [1, 32], strides = [1, 1]} : vector<1x64xf32> to vector<1x32xf32>
    %14 = vector.extract_strided_slice %12 {offsets = [0, 32], sizes = [1, 32], strides = [1, 1]} : vector<1x64xf32> to vector<1x32xf32>
    %15 = arith.mulf %14, %3 : vector<1x32xf32>
    %cst_7 = arith.constant dense<0.000000e+00> : vector<1x32xf32>
    %16 = tpu.matmul %15, %2, %cst_7 {dimension_numbers = #tpu.dot_dimension_numbers<[1], [0], [0], [1], [0, 0, 1, 1], [], []>} : vector<1x32xf32>, vector<32x32xf32>, vector<1x32xf32> -> vector<1x32xf32>
    %17 = vector.extract_strided_slice %4 {offsets = [0, 64], sizes = [1, 32], strides = [1, 1]} : vector<1x96xf32> to vector<1x32xf32>
    %18 = arith.addf %16, %17 : vector<1x32xf32>
    %19 = math.tanh %18 : vector<1x32xf32>
    %cst_8 = arith.constant 1.000000e+00 : f32
    %20 = vector.broadcast %cst_8 : f32 to vector<1x32xf32>
    %21 = arith.subf %20, %13 : vector<1x32xf32>
    %22 = arith.mulf %21, %3 : vector<1x32xf32>
    %23 = arith.mulf %13, %19 : vector<1x32xf32>
    %24 = arith.addf %22, %23 : vector<1x32xf32>
    %25 = vector.extract_strided_slice %0 {offsets = [1, 0], sizes = [1, 96], strides = [1, 1]} : vector<8x96xf32> to vector<1x96xf32>
    %cst_9 = arith.constant dense<0.000000e+00> : vector<1x64xf32>
    %26 = tpu.matmul %24, %1, %cst_9 {dimension_numbers = #tpu.dot_dimension_numbers<[1], [0], [0], [1], [0, 0, 1, 1], [], []>} : vector<1x32xf32>, vector<32x64xf32>, vector<1x64xf32> -> vector<1x64xf32>
    %27 = vector.extract_strided_slice %25 {offsets = [0, 0], sizes = [1, 64], strides = [1, 1]} : vector<1x96xf32> to vector<1x64xf32>
    %28 = arith.addf %26, %27 : vector<1x64xf32>
    %29 = arith.negf %28 : vector<1x64xf32>
    %30 = math.exp %29 : vector<1x64xf32>
    %cst_10 = arith.constant 1.000000e+00 : f32
    %31 = vector.broadcast %cst_10 : f32 to vector<1x64xf32>
    %32 = arith.addf %31, %30 : vector<1x64xf32>
    %33 = arith.divf %31, %32 : vector<1x64xf32>
    %34 = vector.extract_strided_slice %33 {offsets = [0, 0], sizes = [1, 32], strides = [1, 1]} : vector<1x64xf32> to vector<1x32xf32>
    %35 = vector.extract_strided_slice %33 {offsets = [0, 32], sizes = [1, 32], strides = [1, 1]} : vector<1x64xf32> to vector<1x32xf32>
    %36 = arith.mulf %35, %24 : vector<1x32xf32>
    %cst_11 = arith.constant dense<0.000000e+00> : vector<1x32xf32>
    %37 = tpu.matmul %36, %2, %cst_11 {dimension_numbers = #tpu.dot_dimension_numbers<[1], [0], [0], [1], [0, 0, 1, 1], [], []>} : vector<1x32xf32>, vector<32x32xf32>, vector<1x32xf32> -> vector<1x32xf32>
    %38 = vector.extract_strided_slice %25 {offsets = [0, 64], sizes = [1, 32], strides = [1, 1]} : vector<1x96xf32> to vector<1x32xf32>
    %39 = arith.addf %37, %38 : vector<1x32xf32>
    %40 = math.tanh %39 : vector<1x32xf32>
    %cst_12 = arith.constant 1.000000e+00 : f32
    %41 = vector.broadcast %cst_12 : f32 to vector<1x32xf32>
    %42 = arith.subf %41, %34 : vector<1x32xf32>
    %43 = arith.mulf %42, %24 : vector<1x32xf32>
    %44 = arith.mulf %34, %40 : vector<1x32xf32>
    %45 = arith.addf %43, %44 : vector<1x32xf32>
    %46 = vector.extract_strided_slice %0 {offsets = [2, 0], sizes = [1, 96], strides = [1, 1]} : vector<8x96xf32> to vector<1x96xf32>
    %cst_13 = arith.constant dense<0.000000e+00> : vector<1x64xf32>
    %47 = tpu.matmul %45, %1, %cst_13 {dimension_numbers = #tpu.dot_dimension_numbers<[1], [0], [0], [1], [0, 0, 1, 1], [], []>} : vector<1x32xf32>, vector<32x64xf32>, vector<1x64xf32> -> vector<1x64xf32>
    %48 = vector.extract_strided_slice %46 {offsets = [0, 0], sizes = [1, 64], strides = [1, 1]} : vector<1x96xf32> to vector<1x64xf32>
    %49 = arith.addf %47, %48 : vector<1x64xf32>
    %50 = arith.negf %49 : vector<1x64xf32>
    %51 = math.exp %50 : vector<1x64xf32>
    %cst_14 = arith.constant 1.000000e+00 : f32
    %52 = vector.broadcast %cst_14 : f32 to vector<1x64xf32>
    %53 = arith.addf %52, %51 : vector<1x64xf32>
    %54 = arith.divf %52, %53 : vector<1x64xf32>
    %55 = vector.extract_strided_slice %54 {offsets = [0, 0], sizes = [1, 32], strides = [1, 1]} : vector<1x64xf32> to vector<1x32xf32>
    %56 = vector.extract_strided_slice %54 {offsets = [0, 32], sizes = [1, 32], strides = [1, 1]} : vector<1x64xf32> to vector<1x32xf32>
    %57 = arith.mulf %56, %45 : vector<1x32xf32>
    %cst_15 = arith.constant dense<0.000000e+00> : vector<1x32xf32>
    %58 = tpu.matmul %57, %2, %cst_15 {dimension_numbers = #tpu.dot_dimension_numbers<[1], [0], [0], [1], [0, 0, 1, 1], [], []>} : vector<1x32xf32>, vector<32x32xf32>, vector<1x32xf32> -> vector<1x32xf32>
    %59 = vector.extract_strided_slice %46 {offsets = [0, 64], sizes = [1, 32], strides = [1, 1]} : vector<1x96xf32> to vector<1x32xf32>
    %60 = arith.addf %58, %59 : vector<1x32xf32>
    %61 = math.tanh %60 : vector<1x32xf32>
    %cst_16 = arith.constant 1.000000e+00 : f32
    %62 = vector.broadcast %cst_16 : f32 to vector<1x32xf32>
    %63 = arith.subf %62, %55 : vector<1x32xf32>
    %64 = arith.mulf %63, %45 : vector<1x32xf32>
    %65 = arith.mulf %55, %61 : vector<1x32xf32>
    %66 = arith.addf %64, %65 : vector<1x32xf32>
    %67 = vector.extract_strided_slice %0 {offsets = [3, 0], sizes = [1, 96], strides = [1, 1]} : vector<8x96xf32> to vector<1x96xf32>
    %cst_17 = arith.constant dense<0.000000e+00> : vector<1x64xf32>
    %68 = tpu.matmul %66, %1, %cst_17 {dimension_numbers = #tpu.dot_dimension_numbers<[1], [0], [0], [1], [0, 0, 1, 1], [], []>} : vector<1x32xf32>, vector<32x64xf32>, vector<1x64xf32> -> vector<1x64xf32>
    %69 = vector.extract_strided_slice %67 {offsets = [0, 0], sizes = [1, 64], strides = [1, 1]} : vector<1x96xf32> to vector<1x64xf32>
    %70 = arith.addf %68, %69 : vector<1x64xf32>
    %71 = arith.negf %70 : vector<1x64xf32>
    %72 = math.exp %71 : vector<1x64xf32>
    %cst_18 = arith.constant 1.000000e+00 : f32
    %73 = vector.broadcast %cst_18 : f32 to vector<1x64xf32>
    %74 = arith.addf %73, %72 : vector<1x64xf32>
    %75 = arith.divf %73, %74 : vector<1x64xf32>
    %76 = vector.extract_strided_slice %75 {offsets = [0, 0], sizes = [1, 32], strides = [1, 1]} : vector<1x64xf32> to vector<1x32xf32>
    %77 = vector.extract_strided_slice %75 {offsets = [0, 32], sizes = [1, 32], strides = [1, 1]} : vector<1x64xf32> to vector<1x32xf32>
    %78 = arith.mulf %77, %66 : vector<1x32xf32>
    %cst_19 = arith.constant dense<0.000000e+00> : vector<1x32xf32>
    %79 = tpu.matmul %78, %2, %cst_19 {dimension_numbers = #tpu.dot_dimension_numbers<[1], [0], [0], [1], [0, 0, 1, 1], [], []>} : vector<1x32xf32>, vector<32x32xf32>, vector<1x32xf32> -> vector<1x32xf32>
    %80 = vector.extract_strided_slice %67 {offsets = [0, 64], sizes = [1, 32], strides = [1, 1]} : vector<1x96xf32> to vector<1x32xf32>
    %81 = arith.addf %79, %80 : vector<1x32xf32>
    %82 = math.tanh %81 : vector<1x32xf32>
    %cst_20 = arith.constant 1.000000e+00 : f32
    %83 = vector.broadcast %cst_20 : f32 to vector<1x32xf32>
    %84 = arith.subf %83, %76 : vector<1x32xf32>
    %85 = arith.mulf %84, %66 : vector<1x32xf32>
    %86 = arith.mulf %76, %82 : vector<1x32xf32>
    %87 = arith.addf %85, %86 : vector<1x32xf32>
    %88 = vector.extract_strided_slice %0 {offsets = [4, 0], sizes = [1, 96], strides = [1, 1]} : vector<8x96xf32> to vector<1x96xf32>
    %cst_21 = arith.constant dense<0.000000e+00> : vector<1x64xf32>
    %89 = tpu.matmul %87, %1, %cst_21 {dimension_numbers = #tpu.dot_dimension_numbers<[1], [0], [0], [1], [0, 0, 1, 1], [], []>} : vector<1x32xf32>, vector<32x64xf32>, vector<1x64xf32> -> vector<1x64xf32>
    %90 = vector.extract_strided_slice %88 {offsets = [0, 0], sizes = [1, 64], strides = [1, 1]} : vector<1x96xf32> to vector<1x64xf32>
    %91 = arith.addf %89, %90 : vector<1x64xf32>
    %92 = arith.negf %91 : vector<1x64xf32>
    %93 = math.exp %92 : vector<1x64xf32>
    %cst_22 = arith.constant 1.000000e+00 : f32
    %94 = vector.broadcast %cst_22 : f32 to vector<1x64xf32>
    %95 = arith.addf %94, %93 : vector<1x64xf32>
    %96 = arith.divf %94, %95 : vector<1x64xf32>
    %97 = vector.extract_strided_slice %96 {offsets = [0, 0], sizes = [1, 32], strides = [1, 1]} : vector<1x64xf32> to vector<1x32xf32>
    %98 = vector.extract_strided_slice %96 {offsets = [0, 32], sizes = [1, 32], strides = [1, 1]} : vector<1x64xf32> to vector<1x32xf32>
    %99 = arith.mulf %98, %87 : vector<1x32xf32>
    %cst_23 = arith.constant dense<0.000000e+00> : vector<1x32xf32>
    %100 = tpu.matmul %99, %2, %cst_23 {dimension_numbers = #tpu.dot_dimension_numbers<[1], [0], [0], [1], [0, 0, 1, 1], [], []>} : vector<1x32xf32>, vector<32x32xf32>, vector<1x32xf32> -> vector<1x32xf32>
    %101 = vector.extract_strided_slice %88 {offsets = [0, 64], sizes = [1, 32], strides = [1, 1]} : vector<1x96xf32> to vector<1x32xf32>
    %102 = arith.addf %100, %101 : vector<1x32xf32>
    %103 = math.tanh %102 : vector<1x32xf32>
    %cst_24 = arith.constant 1.000000e+00 : f32
    %104 = vector.broadcast %cst_24 : f32 to vector<1x32xf32>
    %105 = arith.subf %104, %97 : vector<1x32xf32>
    %106 = arith.mulf %105, %87 : vector<1x32xf32>
    %107 = arith.mulf %97, %103 : vector<1x32xf32>
    %108 = arith.addf %106, %107 : vector<1x32xf32>
    %109 = vector.extract_strided_slice %0 {offsets = [5, 0], sizes = [1, 96], strides = [1, 1]} : vector<8x96xf32> to vector<1x96xf32>
    %cst_25 = arith.constant dense<0.000000e+00> : vector<1x64xf32>
    %110 = tpu.matmul %108, %1, %cst_25 {dimension_numbers = #tpu.dot_dimension_numbers<[1], [0], [0], [1], [0, 0, 1, 1], [], []>} : vector<1x32xf32>, vector<32x64xf32>, vector<1x64xf32> -> vector<1x64xf32>
    %111 = vector.extract_strided_slice %109 {offsets = [0, 0], sizes = [1, 64], strides = [1, 1]} : vector<1x96xf32> to vector<1x64xf32>
    %112 = arith.addf %110, %111 : vector<1x64xf32>
    %113 = arith.negf %112 : vector<1x64xf32>
    %114 = math.exp %113 : vector<1x64xf32>
    %cst_26 = arith.constant 1.000000e+00 : f32
    %115 = vector.broadcast %cst_26 : f32 to vector<1x64xf32>
    %116 = arith.addf %115, %114 : vector<1x64xf32>
    %117 = arith.divf %115, %116 : vector<1x64xf32>
    %118 = vector.extract_strided_slice %117 {offsets = [0, 0], sizes = [1, 32], strides = [1, 1]} : vector<1x64xf32> to vector<1x32xf32>
    %119 = vector.extract_strided_slice %117 {offsets = [0, 32], sizes = [1, 32], strides = [1, 1]} : vector<1x64xf32> to vector<1x32xf32>
    %120 = arith.mulf %119, %108 : vector<1x32xf32>
    %cst_27 = arith.constant dense<0.000000e+00> : vector<1x32xf32>
    %121 = tpu.matmul %120, %2, %cst_27 {dimension_numbers = #tpu.dot_dimension_numbers<[1], [0], [0], [1], [0, 0, 1, 1], [], []>} : vector<1x32xf32>, vector<32x32xf32>, vector<1x32xf32> -> vector<1x32xf32>
    %122 = vector.extract_strided_slice %109 {offsets = [0, 64], sizes = [1, 32], strides = [1, 1]} : vector<1x96xf32> to vector<1x32xf32>
    %123 = arith.addf %121, %122 : vector<1x32xf32>
    %124 = math.tanh %123 : vector<1x32xf32>
    %cst_28 = arith.constant 1.000000e+00 : f32
    %125 = vector.broadcast %cst_28 : f32 to vector<1x32xf32>
    %126 = arith.subf %125, %118 : vector<1x32xf32>
    %127 = arith.mulf %126, %108 : vector<1x32xf32>
    %128 = arith.mulf %118, %124 : vector<1x32xf32>
    %129 = arith.addf %127, %128 : vector<1x32xf32>
    %130 = vector.extract_strided_slice %0 {offsets = [6, 0], sizes = [1, 96], strides = [1, 1]} : vector<8x96xf32> to vector<1x96xf32>
    %cst_29 = arith.constant dense<0.000000e+00> : vector<1x64xf32>
    %131 = tpu.matmul %129, %1, %cst_29 {dimension_numbers = #tpu.dot_dimension_numbers<[1], [0], [0], [1], [0, 0, 1, 1], [], []>} : vector<1x32xf32>, vector<32x64xf32>, vector<1x64xf32> -> vector<1x64xf32>
    %132 = vector.extract_strided_slice %130 {offsets = [0, 0], sizes = [1, 64], strides = [1, 1]} : vector<1x96xf32> to vector<1x64xf32>
    %133 = arith.addf %131, %132 : vector<1x64xf32>
    %134 = arith.negf %133 : vector<1x64xf32>
    %135 = math.exp %134 : vector<1x64xf32>
    %cst_30 = arith.constant 1.000000e+00 : f32
    %136 = vector.broadcast %cst_30 : f32 to vector<1x64xf32>
    %137 = arith.addf %136, %135 : vector<1x64xf32>
    %138 = arith.divf %136, %137 : vector<1x64xf32>
    %139 = vector.extract_strided_slice %138 {offsets = [0, 0], sizes = [1, 32], strides = [1, 1]} : vector<1x64xf32> to vector<1x32xf32>
    %140 = vector.extract_strided_slice %138 {offsets = [0, 32], sizes = [1, 32], strides = [1, 1]} : vector<1x64xf32> to vector<1x32xf32>
    %141 = arith.mulf %140, %129 : vector<1x32xf32>
    %cst_31 = arith.constant dense<0.000000e+00> : vector<1x32xf32>
    %142 = tpu.matmul %141, %2, %cst_31 {dimension_numbers = #tpu.dot_dimension_numbers<[1], [0], [0], [1], [0, 0, 1, 1], [], []>} : vector<1x32xf32>, vector<32x32xf32>, vector<1x32xf32> -> vector<1x32xf32>
    %143 = vector.extract_strided_slice %130 {offsets = [0, 64], sizes = [1, 32], strides = [1, 1]} : vector<1x96xf32> to vector<1x32xf32>
    %144 = arith.addf %142, %143 : vector<1x32xf32>
    %145 = math.tanh %144 : vector<1x32xf32>
    %cst_32 = arith.constant 1.000000e+00 : f32
    %146 = vector.broadcast %cst_32 : f32 to vector<1x32xf32>
    %147 = arith.subf %146, %139 : vector<1x32xf32>
    %148 = arith.mulf %147, %129 : vector<1x32xf32>
    %149 = arith.mulf %139, %145 : vector<1x32xf32>
    %150 = arith.addf %148, %149 : vector<1x32xf32>
    %151 = vector.extract_strided_slice %0 {offsets = [7, 0], sizes = [1, 96], strides = [1, 1]} : vector<8x96xf32> to vector<1x96xf32>
    %cst_33 = arith.constant dense<0.000000e+00> : vector<1x64xf32>
    %152 = tpu.matmul %150, %1, %cst_33 {dimension_numbers = #tpu.dot_dimension_numbers<[1], [0], [0], [1], [0, 0, 1, 1], [], []>} : vector<1x32xf32>, vector<32x64xf32>, vector<1x64xf32> -> vector<1x64xf32>
    %153 = vector.extract_strided_slice %151 {offsets = [0, 0], sizes = [1, 64], strides = [1, 1]} : vector<1x96xf32> to vector<1x64xf32>
    %154 = arith.addf %152, %153 : vector<1x64xf32>
    %155 = arith.negf %154 : vector<1x64xf32>
    %156 = math.exp %155 : vector<1x64xf32>
    %cst_34 = arith.constant 1.000000e+00 : f32
    %157 = vector.broadcast %cst_34 : f32 to vector<1x64xf32>
    %158 = arith.addf %157, %156 : vector<1x64xf32>
    %159 = arith.divf %157, %158 : vector<1x64xf32>
    %160 = vector.extract_strided_slice %159 {offsets = [0, 0], sizes = [1, 32], strides = [1, 1]} : vector<1x64xf32> to vector<1x32xf32>
    %161 = vector.extract_strided_slice %159 {offsets = [0, 32], sizes = [1, 32], strides = [1, 1]} : vector<1x64xf32> to vector<1x32xf32>
    %162 = arith.mulf %161, %150 : vector<1x32xf32>
    %cst_35 = arith.constant dense<0.000000e+00> : vector<1x32xf32>
    %163 = tpu.matmul %162, %2, %cst_35 {dimension_numbers = #tpu.dot_dimension_numbers<[1], [0], [0], [1], [0, 0, 1, 1], [], []>} : vector<1x32xf32>, vector<32x32xf32>, vector<1x32xf32> -> vector<1x32xf32>
    %164 = vector.extract_strided_slice %151 {offsets = [0, 64], sizes = [1, 32], strides = [1, 1]} : vector<1x96xf32> to vector<1x32xf32>
    %165 = arith.addf %163, %164 : vector<1x32xf32>
    %166 = math.tanh %165 : vector<1x32xf32>
    %cst_36 = arith.constant 1.000000e+00 : f32
    %167 = vector.broadcast %cst_36 : f32 to vector<1x32xf32>
    %168 = arith.subf %167, %160 : vector<1x32xf32>
    %169 = arith.mulf %168, %150 : vector<1x32xf32>
    %170 = arith.mulf %160, %166 : vector<1x32xf32>
    %171 = arith.addf %169, %170 : vector<1x32xf32>
    %172 = tpu.concatenate %24, %45, %66, %87, %108, %129, %150, %171 in 0 : vector<1x32xf32>, vector<1x32xf32>, vector<1x32xf32>, vector<1x32xf32>, vector<1x32xf32>, vector<1x32xf32>, vector<1x32xf32>, vector<1x32xf32> -> vector<8x32xf32>
    %c0_37 = arith.constant 0 : index
    %c0_38 = arith.constant 0 : index
    %173 = vector.load %arg3[%c0_37, %c0_38] : memref<8x32xf32, #tpu.memory_space<vmem>>, vector<8x32xf32>
    tpu.vector_store %arg3[%c0_37, %c0_38], %172 {strides = array<i32>} : memref<8x32xf32, #tpu.memory_space<vmem>>, vector<8x32xf32>,
    return
  }
}

</mosaic_0001>

<bundles_post_ra>
// kernel: encodeur_forward.1
= control target key start
LH: loop header
LB: loop body
LE: loop exit
PB: predicated region body
PF: predicated region fallthrough
CT: control target
= control target key end

     0   :  { %v1863_v3 = vmov 0.0|0.0   ;;  %vm1864_vm0 = vmmov 0   ;;  %v1865_v6 = vmov 0.0   ;;  %s2120_s0 = inlined_call_operand.vmem [shape: f32[8,96], index: 0, kind: input, shape index: {}]   ;;  %s2121_s1 = inlined_call_operand.vmem [shape: f32[32,64], index: 1, kind: input, shape index: {}]   ;;  %s2122_s2 = inlined_call_operand.vmem [shape: f32[32,32], index: 2, kind: input, shape index: {}]   ;;  %s2123_s3 = inlined_call_operand.hbm [shape: f32[8,32], index: 3, kind: output, shape index: {}]  }
   0x1   :  { %v16_v0 = vld [vmem:[%s2121_s1] sm:$0xff]  ;;  %v17_v1 = vld [vmem:[%s2121_s1 + $0x8] sm:$0xff]  ;;  %v18_v2 = vld [vmem:[%s2121_s1 + $0x10] sm:$0xff]  ;;  %1688 = vmatprep.subr.bf16.mxu0 %v1863_v3  ;;  %1520 = vmatprep.mubr.msk.f32.mxu0 %vm1864_vm0, %v1865_v6 }
   0x2   :  { %v1900_v4 = vpack.c.bf16 %v17_v1, %v16_v0  ;;  %v19_v5 = vld [vmem:[%s2121_s1 + $0x18] sm:$0xff] }
   0x3   :  { %8 = vsyncpa [#allocation3], 0  ;;  %1694 = vmatprep.subr.bf16.mxu1 %v1863_v3  ;;  %1531 = vmatprep.mubr.msk.f32.mxu1 %vm1864_vm0, %v1865_v6  ;;  %v1911_v7 = vpack.c.bf16 %v19_v5, %v18_v2  ;;  %v20_v8 = vld [vmem:[%s2122_s2] sm:$0xff]  ;;  %v21_v9 = vld [vmem:[%s2122_s2 + $0x8] sm:$0xff]  ;;  %s1867_s29 = smov 64   ;;  %vm24_vm1 = vcmask 261120  }
   0x4   :  { %1690 = vmatpush3.bf16.msra.mxu0 %v1900_v4  ;;  %v22_v10 = vld [vmem:[%s2122_s2 + $0x10] sm:$0xff]  ;;  %v1932_v11 = vpack.c.bf16 %v21_v9, %v20_v8  ;;  %v23_v12 = vld [vmem:[%s2122_s2 + $0x18] sm:$0xff]  ;;  %v1946_v14 = vld [vmem:[%s2120_s0] sm:$0xff]  ;;  %s1866_s2 = smov 96   ;;  %s1868_s0 = smov 32   ;;  %vm1380_vm2 = vcmask 1040384  }
   0x5   :  { %1691 = vmatprep.subr.bf16.mxu0 %v1863_v3  ;;  %v1938_v13 = vpack.c.bf16 %v23_v12, %v22_v10  ;;  %v189_v28 = vrot.slane %v1946_v14, 1  ;;  %v357_v53 = vrot.slane %v1946_v14, 2  ;;  %vm1382_vm3 = vcmask 1041408   ;;  %s1869_s30 = smov [#allocation2]  }
   0x6   :  { %1696 = vmatpush3.bf16.msra.mxu1 %v1932_v11  ;;  %vm1384_vm4 = vcmask 1042432   ;;  %vm1386_vm5 = vcmask 1043456   ;;  %vm1388_vm6 = vcmask 1044480   ;;  %vm1390_vm7 = vcmask 1045504   ;;  %s1401_s4 = sshll.u32 %s1869_s30, 4  ;;  %s1402_s4 = int_to_ptr.vmem [resolvable:$true] %s1401_s4 }
   0x7   :  { %1697 = vmatprep.subr.bf16.mxu1 %v1863_v3  ;;  %vm1392_vm8 = vcmask 1046528   ;;  %s1839_s5 = scalar_lea.vmem %s1402_s4, 128  ;;  %p1844_p1 = scmp.lt.s32.totalorder %s1402_s4, %s1402_s4 }
   0x8   :  { %1693 = vmatpush3.bf16.msra.mxu0 %v1911_v7  ;;  %p1840_p0 = scmp.ne.s32.totalorder %s1402_s4, %s1839_s5  ;;  %p1845_p2 = scmp.lt.s32.totalorder %s1839_s5, %s1839_s5 }
   0x9   :  { %1700 = vmatprep.subr.bf16.mxu0 %v1863_v3 }
   0xa   :  { %1699 = vmatpush3.bf16.msra.mxu1 %v1938_v13  ;;  %p1846_p3 = por %p1845_p2, %p1844_p1 }
   0xb   :  { %1521 = vmatmul.mubr.f32.vlgmr.msra.gmra.mrb[0].mxu0 %v1865_v6  ;;  %1706 = vmatprep.subr.bf16.mxu1 %v1863_v3 }
   0xc   :  { %1702 = vmatpush3.bf16.msra.mxu0 %v1900_v4  ;;  %1542 = vmatprep.mubr.msk.f32.mxu0 %vm1864_vm0, %v1865_v6  ;;  %p1847_p4 = pnand %p1846_p3, %p1840_p0 }
   0xd   :  { %1703 = vmatprep.subr.bf16.mxu0 %v1863_v3 }
  0x10   :  { %1705 = vmatpush3.bf16.msra.mxu0 %v1911_v7 }
  0x11   :  { %1712 = vmatprep.subr.bf16.mxu0 %v1863_v3 }
  0xde   :  { %v94_v15 = vpop.f32.mrb[0].mxu0 }
  0xdf   :  { %v95_v16 = vadd.f32 %v94_v15, %v1946_v14  ;;  %v1522_v17 = vpop.f32.mrb[1].mxu0 }
  0xe1   :  { %v1409_v18 = vmul.f32 -1.442695, %v95_v16  ;;  %v525_v16 = vrot.slane %v1946_v14, 3 }
  0xe3   :  { %1791 = vpow2.f32 %v1409_v18 }
  0xed   :  { %v1792_v19 = vpop.eup %1791 }
  0xee   :  { %v101_v20 = vadd.f32 1.0, %v1792_v19 }
  0xf0   :  { %1793 = vrcp.f32 %v101_v20 }
  0xfa   :  { %v1794_v21 = vpop.eup %1793 }
  0xfb   :  { %v104_v22 = vmul.f32 0.0, %v1794_v21  ;;  %v185_v29 = vsub.f32 1.0, %v1794_v21 }
  0xfd   :  { %106 = vrot.lane.b32.xlu0 %v104_v22, %s1866_s2  ;;  %v186_v31 = vmul.f32 0.0, %v185_v29 }
 0x101   :  { %109 = vrot.lane.b32.xlu0 %v1946_v14, %s1867_s29 }
 0x105   :  { %277 = vrot.lane.b32.xlu0 %v189_v28, %s1867_s29 }
 0x16f   :  { %v107_v23 = vpop.permute.xlu0 %106 }
 0x170   :  { %1532 = vmatmul.mubr.msk.f32.vlgmr.msra.gmra.mrb[0].mxu1 %vm24_vm1, %v107_v23 }
 0x171   :  { %1708 = vmatpush3.bf16.msra.mxu1 %v1932_v11  ;;  %1553 = vmatprep.mubr.msk.f32.mxu1 %vm1864_vm0, %v1865_v6 }
 0x172   :  { %1709 = vmatprep.subr.bf16.mxu1 %v1863_v3 }
 0x173   :  { %v110_v24 = vpop.permute.xlu0 %109 }
 0x175   :  { %1711 = vmatpush3.bf16.msra.mxu1 %v1938_v13 }
 0x176   :  { %1718 = vmatprep.subr.bf16.mxu1 %v1863_v3 }
 0x177   :  { %v278_v44 = vpop.permute.xlu0 %277 }
 0x243   :  { %v180_v25 = vpop.f32.mrb[0].mxu1 }
 0x244   :  { %v181_v26 = vadd.f32 %v180_v25, %v110_v24  ;;  %v1533_v27 = vpop.f32.mrb[1].mxu1 }
 0x246   :  { %1795 = vtanh.f32 %v181_v26 }
 0x250   :  { %v1796_v30 = vpop.eup %1795 }
 0x251   :  { %v187_v32 = vmul.f32 %v1796_v30, %v1794_v21 }
 0x253   :  { %v1961_v33 = vadd.f32 %v187_v32, %v186_v31 }
 0x255   :  { %270 = vrot.lane.b32.xlu1 %v1961_v33, %s1868_s0  ;;  %1543 = vmatmul.mubr.msk.f32.vlgmr.msra.gmra.mrb[2].mxu0 %vm24_vm1, %v1961_v33 }
 0x256   :  { %1714 = vmatpush3.bf16.msra.mxu0 %v1900_v4  ;;  %1564 = vmatprep.mubr.msk.f32.mxu0 %vm1864_vm0, %v1865_v6 }
 0x257   :  { %1715 = vmatprep.subr.bf16.mxu0 %v1863_v3 }
 0x25a   :  { %1717 = vmatpush3.bf16.msra.mxu0 %v1911_v7 }
 0x25b   :  { %1724 = vmatprep.subr.bf16.mxu0 %v1863_v3 }
 0x2c7   :  { %v271_v41 = vpop.permute.xlu1 %270 }
 0x328   :  { %v260_v34 = vpop.f32.mrb[2].mxu0 }
 0x329   :  { %v261_v35 = vadd.f32 %v260_v34, %v189_v28  ;;  %v1544_v36 = vpop.f32.mrb[3].mxu0 }
 0x32b   :  { %v1412_v37 = vmul.f32 -1.442695, %v261_v35 }
 0x32d   :  { %1797 = vpow2.f32 %v1412_v37  ;;  %v693_v37 = vrot.slane %v1946_v14, 4 }
 0x337   :  { %v1798_v38 = vpop.eup %1797 }
 0x338   :  { %v267_v39 = vadd.f32 1.0, %v1798_v38 }
 0x33a   :  { %1799 = vrcp.f32 %v267_v39 }
 0x344   :  { %v1800_v40 = vpop.eup %1799 }
 0x345   :  { %v273_v42 = vmul.f32 %v1800_v40, %v271_v41  ;;  %v353_v48 = vsub.f32 1.0, %v1800_v40 }
 0x347   :  { %275 = vrot.lane.b32.xlu1 %v273_v42, %s1866_s2  ;;  %v354_v50 = vmul.f32 %v353_v48, %v1961_v33 }
 0x3b9   :  { %v276_v43 = vpop.permute.xlu1 %275 }
 0x3ba   :  { %1554 = vmatmul.mubr.msk.f32.vlgmr.msra.gmra.mrb[2].mxu1 %vm24_vm1, %v276_v43 }
 0x3bb   :  { %1720 = vmatpush3.bf16.msra.mxu1 %v1932_v11  ;;  %1575 = vmatprep.mubr.msk.f32.mxu1 %vm1864_vm0, %v1865_v6 }
 0x3bc   :  { %1721 = vmatprep.subr.bf16.mxu1 %v1863_v3 }
 0x3bf   :  { %1723 = vmatpush3.bf16.msra.mxu1 %v1938_v13 }
 0x3c0   :  { %1730 = vmatprep.subr.bf16.mxu1 %v1863_v3 }
 0x48d   :  { %v348_v45 = vpop.f32.mrb[2].mxu1 }
 0x48e   :  { %v349_v46 = vadd.f32 %v348_v45, %v278_v44  ;;  %v1555_v47 = vpop.f32.mrb[3].mxu1 }
 0x490   :  { %1801 = vtanh.f32 %v349_v46 }
 0x49a   :  { %v1802_v49 = vpop.eup %1801 }
 0x49b   :  { %v355_v51 = vmul.f32 %v1802_v49, %v1800_v40 }
 0x49d   :  { %v1982_v52 = vadd.f32 %v355_v51, %v354_v50 }
 0x49f   :  { %438 = vrot.lane.b32.xlu1 %v1982_v52, %s1868_s0  ;;  %1565 = vmatmul.mubr.msk.f32.vlgmr.msra.gmra.mrb[4].mxu0 %vm24_vm1, %v1982_v52 }
 0x4a0   :  { %1726 = vmatpush3.bf16.msra.mxu0 %v1900_v4  ;;  %1586 = vmatprep.mubr.msk.f32.mxu0 %vm1864_vm0, %v1865_v6 }
 0x4a1   :  { %1727 = vmatprep.subr.bf16.mxu0 %v1863_v3 }
 0x4a3   :  { %445 = vrot.lane.b32.xlu1 %v357_v53, %s1867_s29 }
 0x4a4   :  { %1729 = vmatpush3.bf16.msra.mxu0 %v1911_v7 }
 0x4a5   :  { %1736 = vmatprep.subr.bf16.mxu0 %v1863_v3 }
 0x511   :  { %v439_v61 = vpop.permute.xlu1 %438 }
 0x515   :  { %v446_v0 = vpop.permute.xlu1 %445 }
 0x572   :  { %v428_v54 = vpop.f32.mrb[4].mxu0 }
 0x573   :  { %v429_v55 = vadd.f32 %v428_v54, %v357_v53  ;;  %v1566_v56 = vpop.f32.mrb[5].mxu0 }
 0x575   :  { %v1415_v57 = vmul.f32 -1.442695, %v429_v55 }
 0x577   :  { %1803 = vpow2.f32 %v1415_v57 }
 0x581   :  { %v1804_v58 = vpop.eup %1803 }
 0x582   :  { %v435_v59 = vadd.f32 1.0, %v1804_v58  ;;  %v861_v58 = vrot.slane %v1946_v14, 5 }
 0x584   :  { %1805 = vrcp.f32 %v435_v59 }
 0x58e   :  { %v1806_v60 = vpop.eup %1805 }
 0x58f   :  { %v441_v62 = vmul.f32 %v1806_v60, %v439_v61  ;;  %v521_v8 = vsub.f32 1.0, %v1806_v60 }
 0x591   :  { %443 = vrot.lane.b32.xlu0 %v441_v62, %s1866_s2  ;;  %v522_v10 = vmul.f32 %v521_v8, %v1982_v52 }
 0x603   :  { %v444_v63 = vpop.permute.xlu0 %443 }
 0x604   :  { %1576 = vmatmul.mubr.msk.f32.vlgmr.msra.gmra.mrb[4].mxu1 %vm24_vm1, %v444_v63 }
 0x605   :  { %1732 = vmatpush3.bf16.msra.mxu1 %v1932_v11  ;;  %1597 = vmatprep.mubr.msk.f32.mxu1 %vm1864_vm0, %v1865_v6 }
 0x606   :  { %1733 = vmatprep.subr.bf16.mxu1 %v1863_v3 }
 0x609   :  { %1735 = vmatpush3.bf16.msra.mxu1 %v1938_v13 }
 0x60a   :  { %1742 = vmatprep.subr.bf16.mxu1 %v1863_v3 }
 0x6d7   :  { %v516_v1 = vpop.f32.mrb[4].mxu1 }
 0x6d8   :  { %v517_v2 = vadd.f32 %v516_v1, %v446_v0  ;;  %v1577_v5 = vpop.f32.mrb[5].mxu1 }
 0x6da   :  { %1807 = vtanh.f32 %v517_v2 }
 0x6e4   :  { %v1808_v9 = vpop.eup %1807 }
 0x6e5   :  { %v523_v12 = vmul.f32 %v1808_v9, %v1806_v60 }
 0x6e7   :  { %v2005_v15 = vadd.f32 %v523_v12, %v522_v10 }
 0x6e9   :  { %606 = vrot.lane.b32.xlu0 %v2005_v15, %s1868_s0  ;;  %1587 = vmatmul.mubr.msk.f32.vlgmr.msra.gmra.mrb[6].mxu0 %vm24_vm1, %v2005_v15 }
 0x6ea   :  { %1738 = vmatpush3.bf16.msra.mxu0 %v1900_v4  ;;  %1608 = vmatprep.mubr.msk.f32.mxu0 %vm1864_vm0, %v1865_v6 }
 0x6eb   :  { %1739 = vmatprep.subr.bf16.mxu0 %v1863_v3 }
 0x6ed   :  { %613 = vrot.lane.b32.xlu0 %v525_v16, %s1867_s29 }
 0x6ee   :  { %1741 = vmatpush3.bf16.msra.mxu0 %v1911_v7 }
 0x6ef   :  { %1748 = vmatprep.subr.bf16.mxu0 %v1863_v3 }
 0x75b   :  { %v607_v24 = vpop.permute.xlu0 %606 }
 0x75f   :  { %v614_v27 = vpop.permute.xlu0 %613 }
 0x7bc   :  { %v596_v17 = vpop.f32.mrb[6].mxu0 }
 0x7bd   :  { %v597_v18 = vadd.f32 %v596_v17, %v525_v16  ;;  %v1588_v19 = vpop.f32.mrb[7].mxu0 }
 0x7bf   :  { %v1418_v20 = vmul.f32 -1.442695, %v597_v18 }
 0x7c1   :  { %1809 = vpow2.f32 %v1418_v20 }
 0x7cb   :  { %v1810_v21 = vpop.eup %1809 }
 0x7cc   :  { %v603_v22 = vadd.f32 1.0, %v1810_v21 }
 0x7ce   :  { %1811 = vrcp.f32 %v603_v22  ;;  %v1029_v22 = vrot.slane %v1946_v14, 6 }
 0x7d8   :  { %v1812_v23 = vpop.eup %1811 }
 0x7d9   :  { %v609_v25 = vmul.f32 %v1812_v23, %v607_v24  ;;  %v689_v31 = vsub.f32 1.0, %v1812_v23 }
 0x7db   :  { %611 = vrot.lane.b32.xlu1 %v609_v25, %s1866_s2  ;;  %v690_v34 = vmul.f32 %v689_v31, %v2005_v15 }
 0x84d   :  { %v612_v26 = vpop.permute.xlu1 %611 }
 0x84e   :  { %1598 = vmatmul.mubr.msk.f32.vlgmr.msra.gmra.mrb[6].mxu1 %vm24_vm1, %v612_v26 }
 0x84f   :  { %1744 = vmatpush3.bf16.msra.mxu1 %v1932_v11  ;;  %1619 = vmatprep.mubr.msk.f32.mxu1 %vm1864_vm0, %v1865_v6 }
 0x850   :  { %1745 = vmatprep.subr.bf16.mxu1 %v1863_v3 }
 0x853   :  { %1747 = vmatpush3.bf16.msra.mxu1 %v1938_v13 }
 0x854   :  { %1754 = vmatprep.subr.bf16.mxu1 %v1863_v3 }
 0x921   :  { %v684_v28 = vpop.f32.mrb[6].mxu1 }
 0x922   :  { %v685_v29 = vadd.f32 %v684_v28, %v614_v27  ;;  %v1599_v30 = vpop.f32.mrb[7].mxu1 }
 0x924   :  { %1813 = vtanh.f32 %v685_v29 }
 0x92e   :  { %v1814_v32 = vpop.eup %1813 }
 0x92f   :  { %v691_v35 = vmul.f32 %v1814_v32, %v1812_v23 }
 0x931   :  { %v2028_v36 = vadd.f32 %v691_v35, %v690_v34 }
 0x933   :  { %774 = vrot.lane.b32.xlu1 %v2028_v36, %s1868_s0  ;;  %1609 = vmatmul.mubr.msk.f32.vlgmr.msra.gmra.mrb[8].mxu0 %vm24_vm1, %v2028_v36 }
 0x934   :  { %1750 = vmatpush3.bf16.msra.mxu0 %v1900_v4  ;;  %1630 = vmatprep.mubr.msk.f32.mxu0 %vm1864_vm0, %v1865_v6 }
 0x935   :  { %1751 = vmatprep.subr.bf16.mxu0 %v1863_v3 }
 0x937   :  { %781 = vrot.lane.b32.xlu1 %v693_v37, %s1867_s29 }
 0x938   :  { %1753 = vmatpush3.bf16.msra.mxu0 %v1911_v7 }
 0x939   :  { %1760 = vmatprep.subr.bf16.mxu0 %v1863_v3 }
 0x9a5   :  { %v775_v45 = vpop.permute.xlu1 %774 }
 0x9a9   :  { %v782_v48 = vpop.permute.xlu1 %781 }
 0xa06   :  { %v764_v38 = vpop.f32.mrb[8].mxu0 }
 0xa07   :  { %v765_v39 = vadd.f32 %v764_v38, %v693_v37  ;;  %v1610_v40 = vpop.f32.mrb[9].mxu0 }
 0xa09   :  { %v1421_v41 = vmul.f32 -1.442695, %v765_v39 }
 0xa0b   :  { %1815 = vpow2.f32 %v1421_v41 }
 0xa15   :  { %v1816_v42 = vpop.eup %1815 }
 0xa16   :  { %v771_v43 = vadd.f32 1.0, %v1816_v42 }
 0xa18   :  { %1817 = vrcp.f32 %v771_v43 }
 0xa22   :  { %v1818_v44 = vpop.eup %1817 }
 0xa23   :  { %v777_v46 = vmul.f32 %v1818_v44, %v775_v45  ;;  %v857_v53 = vsub.f32 1.0, %v1818_v44 }
 0xa25   :  { %779 = vrot.lane.b32.xlu0 %v777_v46, %s1866_s2  ;;  %v858_v55 = vmul.f32 %v857_v53, %v2028_v36  ;;  %v1365_v53 = vrot.slane %v1982_v52, 7 }
 0xa97   :  { %v780_v47 = vpop.permute.xlu0 %779 }
 0xa98   :  { %1620 = vmatmul.mubr.msk.f32.vlgmr.msra.gmra.mrb[8].mxu1 %vm24_vm1, %v780_v47 }
 0xa99   :  { %1756 = vmatpush3.bf16.msra.mxu1 %v1932_v11  ;;  %1641 = vmatprep.mubr.msk.f32.mxu1 %vm1864_vm0, %v1865_v6 }
 0xa9a   :  { %1757 = vmatprep.subr.bf16.mxu1 %v1863_v3 }
 0xa9d   :  { %1759 = vmatpush3.bf16.msra.mxu1 %v1938_v13 }
 0xa9e   :  { %1766 = vmatprep.subr.bf16.mxu1 %v1863_v3 }
 0xb6b   :  { %v852_v49 = vpop.f32.mrb[8].mxu1 }
 0xb6c   :  { %v853_v50 = vadd.f32 %v852_v49, %v782_v48  ;;  %v1621_v51 = vpop.f32.mrb[9].mxu1 }
 0xb6e   :  { %1819 = vtanh.f32 %v853_v50 }
 0xb78   :  { %v1820_v54 = vpop.eup %1819 }
 0xb79   :  { %v859_v56 = vmul.f32 %v1820_v54, %v1818_v44 }
 0xb7b   :  { %v2051_v57 = vadd.f32 %v859_v56, %v858_v55  ;;  %v1367_v55 = vrot.slane %v2005_v15, 6  ;;  %v1369_v56 = vrot.slane %v2028_v36, 5 }
 0xb7d   :  { %942 = vrot.lane.b32.xlu0 %v2051_v57, %s1868_s0  ;;  %1631 = vmatmul.mubr.msk.f32.vlgmr.msra.gmra.mrb[10].mxu0 %vm24_vm1, %v2051_v57 }
 0xb7e   :  { %1762 = vmatpush3.bf16.msra.mxu0 %v1900_v4  ;;  %1652 = vmatprep.mubr.msk.f32.mxu0 %vm1864_vm0, %v1865_v6 }
 0xb7f   :  { %1763 = vmatprep.subr.bf16.mxu0 %v1863_v3 }
 0xb81   :  { %949 = vrot.lane.b32.xlu0 %v861_v58, %s1867_s29 }
 0xb82   :  { %1765 = vmatpush3.bf16.msra.mxu0 %v1911_v7 }
 0xb83   :  { %1772 = vmatprep.subr.bf16.mxu0 %v1863_v3 }
 0xbef   :  { %v943_v2 = vpop.permute.xlu0 %942 }
 0xbf3   :  { %v950_v9 = vpop.permute.xlu0 %949 }
 0xc50   :  { %v932_v59 = vpop.f32.mrb[10].mxu0 }
 0xc51   :  { %v933_v60 = vadd.f32 %v932_v59, %v861_v58  ;;  %v1632_v61 = vpop.f32.mrb[11].mxu0  ;;  %v1371_v59 = vrot.slane %v2051_v57, 4 }
 0xc53   :  { %v1424_v62 = vmul.f32 -1.442695, %v933_v60  ;;  %v1381_v60 = vsel %vm1380_vm2, %v1961_v33, %v1365_v53 }
 0xc54   :  { %v1383_v52 = vsel %vm1382_vm3, %v1381_v60, %v1367_v55 }
 0xc55   :  { %1821 = vpow2.f32 %v1424_v62 }
 0xc5f   :  { %v1822_v63 = vpop.eup %1821 }
 0xc60   :  { %v939_v0 = vadd.f32 1.0, %v1822_v63 }
 0xc62   :  { %1823 = vrcp.f32 %v939_v0 }
 0xc6c   :  { %v1824_v1 = vpop.eup %1823 }
 0xc6d   :  { %v945_v5 = vmul.f32 %v1824_v1, %v943_v2  ;;  %v1025_v17 = vsub.f32 1.0, %v1824_v1  ;;  %v1385_v2 = vsel %vm1384_vm4, %v1383_v52, %v1369_v56 }
 0xc6e   :  { %v1387_v15 = vsel %vm1386_vm5, %v1385_v2, %v1371_v59 }
 0xc6f   :  { %947 = vrot.lane.b32.xlu1 %v945_v5, %s1866_s2  ;;  %v1026_v19 = vmul.f32 %v1025_v17, %v2051_v57 }
 0xce1   :  { %v948_v8 = vpop.permute.xlu1 %947 }
 0xce2   :  { %1642 = vmatmul.mubr.msk.f32.vlgmr.msra.gmra.mrb[10].mxu1 %vm24_vm1, %v948_v8 }
 0xce3   :  { %1768 = vmatpush3.bf16.msra.mxu1 %v1932_v11  ;;  %1663 = vmatprep.mubr.msk.f32.mxu1 %vm1864_vm0, %v1865_v6 }
 0xce4   :  { %1769 = vmatprep.subr.bf16.mxu1 %v1863_v3 }
 0xce7   :  { %1771 = vmatpush3.bf16.msra.mxu1 %v1938_v13 }
 0xce8   :  { %1778 = vmatprep.subr.bf16.mxu1 %v1863_v3 }
 0xdb5   :  { %v1020_v10 = vpop.f32.mrb[10].mxu1 }
 0xdb6   :  { %v1021_v12 = vadd.f32 %v1020_v10, %v950_v9  ;;  %v1643_v16 = vpop.f32.mrb[11].mxu1 }
 0xdb8   :  { %1825 = vtanh.f32 %v1021_v12 }
 0xdc2   :  { %v1826_v18 = vpop.eup %1825 }
 0xdc3   :  { %v1027_v20 = vmul.f32 %v1826_v18, %v1824_v1 }
 0xdc5   :  { %v2074_v21 = vadd.f32 %v1027_v20, %v1026_v19 }
 0xdc7   :  { %1110 = vrot.lane.b32.xlu1 %v2074_v21, %s1868_s0  ;;  %1653 = vmatmul.mubr.msk.f32.vlgmr.msra.gmra.mrb[12].mxu0 %vm24_vm1, %v2074_v21  ;;  %v1373_v63 = vrot.slane %v2074_v21, 3 }
 0xdc8   :  { %1774 = vmatpush3.bf16.msra.mxu0 %v1900_v4  ;;  %1674 = vmatprep.mubr.msk.f32.mxu0 %vm1864_vm0, %v1865_v6 }
 0xdc9   :  { %1775 = vmatprep.subr.bf16.mxu0 %v1863_v3  ;;  %v1389_v57 = vsel %vm1388_vm6, %v1387_v15, %v1373_v63 }
 0xdcb   :  { %1117 = vrot.lane.b32.xlu1 %v1029_v22, %s1867_s29 }
 0xdcc   :  { %1777 = vmatpush3.bf16.msra.mxu0 %v1911_v7 }
 0xe39   :  { %v1111_v29 = vpop.permute.xlu1 %1110 }
 0xe3d   :  { %v1118_v7 = vpop.permute.xlu1 %1117 }
 0xe9a   :  { %v1100_v23 = vpop.f32.mrb[12].mxu0 }
 0xe9b   :  { %v1101_v24 = vadd.f32 %v1100_v23, %v1029_v22  ;;  %v1654_v25 = vpop.f32.mrb[13].mxu0 }
 0xe9d   :  { %v1427_v26 = vmul.f32 -1.442695, %v1101_v24 }
 0xe9f   :  { %1827 = vpow2.f32 %v1427_v26 }
 0xea9   :  { %v1828_v27 = vpop.eup %1827 }
 0xeaa   :  { %v1107_v28 = vadd.f32 1.0, %v1828_v27 }
 0xeac   :  { %1829 = vrcp.f32 %v1107_v28 }
 0xeb6   :  { %v1830_v4 = vpop.eup %1829 }
 0xeb7   :  { %v1113_v30 = vmul.f32 %v1830_v4, %v1111_v29  ;;  %v1193_v37 = vsub.f32 1.0, %v1830_v4 }
 0xeb9   :  { %1115 = vrot.lane.b32.xlu0 %v1113_v30, %s1866_s2  ;;  %v1194_v39 = vmul.f32 %v1193_v37, %v2074_v21 }
 0xf2b   :  { %v1116_v31 = vpop.permute.xlu0 %1115 }
 0xf2c   :  { %1664 = vmatmul.mubr.msk.f32.vlgmr.msra.gmra.mrb[12].mxu1 %vm24_vm1, %v1116_v31 }
 0xf2d   :  { %1780 = vmatpush3.bf16.msra.mxu1 %v1932_v11  ;;  %1685 = vmatprep.mubr.msk.f32.mxu1 %vm1864_vm0, %v1865_v6  ;;  %v1197_v6 = vrot.slane %v1946_v14, 7 }
 0xf2e   :  { %1781 = vmatprep.subr.bf16.mxu1 %v1863_v3 }
 0xf31   :  { %1783 = vmatpush3.bf16.msra.mxu1 %v1938_v13 }
 0xfff   :  { %v1188_v32 = vpop.f32.mrb[12].mxu1 }
0x1000   :  { %v1189_v34 = vadd.f32 %v1188_v32, %v1118_v7  ;;  %v1665_v35 = vpop.f32.mrb[13].mxu1 }
0x1002   :  { %1831 = vtanh.f32 %v1189_v34 }
0x100c   :  { %v1832_v38 = vpop.eup %1831 }
0x100d   :  { %v1195_v40 = vmul.f32 %v1832_v38, %v1830_v4 }
0x100f   :  { %v1196_v41 = vadd.f32 %v1195_v40, %v1194_v39 }
0x1011   :  { %1278 = vrot.lane.b32.xlu0 %v1196_v41, %s1868_s0  ;;  %1675 = vmatmul.mubr.msk.f32.vlgmr.msra.gmra.mrb[14].mxu0 %vm24_vm1, %v1196_v41  ;;  %v1375_v0 = vrot.slane %v1196_v41, 2 }
0x1013   :  { %v1391_v5 = vsel %vm1390_vm7, %v1389_v57, %v1375_v0 }
0x1015   :  { %1285 = vrot.lane.b32.xlu0 %v1197_v6, %s1867_s29 }
0x1083   :  { %v1279_v46 = vpop.permute.xlu0 %1278 }
0x1087   :  { %v1286_v49 = vpop.permute.xlu0 %1285 }
0x10e4   :  { %v1268_v3 = vpop.f32.mrb[14].mxu0 }
0x10e5   :  { %v1269_v11 = vadd.f32 %v1268_v3, %v1197_v6  ;;  %v1676_v13 = vpop.f32.mrb[15].mxu0 }
0x10e7   :  { %v1430_v42 = vmul.f32 -1.442695, %v1269_v11 }
0x10e9   :  { %1833 = vpow2.f32 %v1430_v42 }
0x10f3   :  { %v1834_v43 = vpop.eup %1833 }
0x10f4   :  { %v1275_v44 = vadd.f32 1.0, %v1834_v43 }
0x10f6   :  { %1835 = vrcp.f32 %v1275_v44 }
0x1100   :  { %v1836_v45 = vpop.eup %1835 }
0x1101   :  { %v1281_v47 = vmul.f32 %v1836_v45, %v1279_v46  ;;  %v1361_v54 = vsub.f32 1.0, %v1836_v45 }
0x1103   :  { %1283 = vrot.lane.b32.xlu1 %v1281_v47, %s1866_s2  ;;  %v1362_v61 = vmul.f32 %v1361_v54, %v1196_v41 }
0x1175   :  { %v1284_v48 = vpop.permute.xlu1 %1283 }
0x1176   :  { %1686 = vmatmul.mubr.msk.f32.vlgmr.msra.gmra.mrb[14].mxu1 %vm24_vm1, %v1284_v48 }
0x1249   :  { %v1356_v14 = vpop.f32.mrb[14].mxu1 }
0x124a   :  { %v1357_v50 = vadd.f32 %v1356_v14, %v1286_v49  ;;  %v1687_v51 = vpop.f32.mrb[15].mxu1 }
0x124c   :  { %1837 = vtanh.f32 %v1357_v50 }
0x1256   :  { %v1838_v58 = vpop.eup %1837 }
0x1257   :  { %v1363_v62 = vmul.f32 %v1838_v58, %v1836_v45 }
0x1259   :  { %v1364_v1 = vadd.f32 %v1363_v62, %v1362_v61 }
0x125b   :  { %v1378_v36 = vrot.slane %v1364_v1, 1 }
0x125d   :  { %v1393_v33 = vsel %vm1392_vm8, %v1391_v5, %v1378_v36 }
0x125e   :  { %1394 = vst.msk [vmem:[#allocation2] sm:$0xff] %vm24_vm1, %v1393_v33 }
0x125f   :  { %1850 = shalt.err (!%p1847_p4)
}
0x1260   :  { %s1851_s8 = scalar_lea.hbm %s2123_s3, 128 }
0x1261   :  { %p1852_p5 = scmp.ne.s32.totalorder %s2123_s3, %s1851_s8  ;;  %p1855_p6 = scmp.lt.u32.totalorder %s1851_s8, %s2123_s3 }
0x1263   :  { %p1857_p7 = pnand %p1855_p6, %p1852_p5 }
0x1265   :  { %1860 = shalt.err (!%p1857_p7)
}
0x1266   :  { %1404 = dma.vmem_to_hbm [thread:$0]  %s1402_s4, 128, %s2123_s3, [#allocation3]  }
0x1267   :  { %1861 = dma.done.wait [#allocation3], 128  }
0x1268   :  { %1862 = vsyncadd [#allocation3], 4294967168 }
0x1269   :  { %1408 = vsyncpa [#allocation3], 1 }

</bundles_post_ra>
